<compile_context>
chip_gen: v7x
topology: tpu7x:2x2x1
jax: 0.10.0
libtpu: 0.0.40
codegen_flags: <defaults>
</compile_context>

<pallas_src>
import math
from functools import partial

import jax
import jax.numpy as jnp
from jax import lax
from jax.experimental import pallas as pl
from jax.experimental.pallas import tpu as pltpu


_VMEM_LIMIT = 48 * 1024 * 1024   # headroom under v7x's 64 MiB physical VMEM


def _largest_tile(n, cap):
    """Largest divisor of n that is <= cap (tiles always divide exactly)."""
    t = max(1, min(cap, n))
    while n % t:
        t -= 1
    return t


# ----------------------------- projection kernels ---------------------------

def _q_proj_kernel(x_ref, w_ref, b_ref, o_ref, *, scale):
    y = jnp.dot(x_ref[...], w_ref[...], preferred_element_type=jnp.float32)
    o_ref[...] = ((y + b_ref[...]) * scale).astype(o_ref.dtype)


def _kv_proj_kernel(xk_ref, xv_ref, wk_ref, wv_ref, bk_ref, bv_ref,
                    k_ref, v_ref):
    yk = jnp.dot(xk_ref[...], wk_ref[...], preferred_element_type=jnp.float32)
    k_ref[...] = (yk + bk_ref[...]).astype(k_ref.dtype)
    yv = jnp.dot(xv_ref[...], wv_ref[...], preferred_element_type=jnp.float32)
    v_ref[...] = (yv + bv_ref[...]).astype(v_ref.dtype)


# ------------------ flash attention + fused output projection ---------------

def _flash_wf_kernel(bias_ref, q_ref, k_ref, v_ref, wo_ref, bo_ref, o_ref,
                     m_ref, l_ref, ctx_ref, acc_ref):
    h = pl.program_id(2)
    ki = pl.program_id(3)
    nh = pl.num_programs(2)
    nk = pl.num_programs(3)
    tk = k_ref.shape[0]

    @pl.when(jnp.logical_and(h == 0, ki == 0))
    def _():                                  # new (batch, q-tile): reset output acc
        acc_ref[...] = jnp.zeros(acc_ref.shape, jnp.float32)

    @pl.when(ki == 0)
    def _():                                  # new head: reset online-softmax state
        m_ref[...] = jnp.full(m_ref.shape, -jnp.inf, jnp.float32)
        l_ref[...] = jnp.zeros(l_ref.shape, jnp.float32)
        ctx_ref[...] = jnp.zeros(ctx_ref.shape, jnp.float32)

    # scores (tq, tk): Q already carries head_dim**-0.5 / sqrt(d_k); contract D.
    s = lax.dot_general(q_ref[...], k_ref[...], (((1,), (1,)), ((), ())),
                        preferred_element_type=jnp.float32)
    col = pl.multiple_of(ki * tk, tk)
    s = s + bias_ref[:, pl.ds(col, tk)]       # additive pad-mask bias (0 / -1e9)

    # --- online softmax update (all in f32 on VPU/EUP) ---
    m_prev = m_ref[...]
    m_new = jnp.maximum(m_prev, jnp.max(s, axis=-1, keepdims=True))
    corr = jnp.exp(m_prev - m_new)
    p = jnp.exp(s - m_new)
    l_ref[...] = corr * l_ref[...] + jnp.sum(p, axis=-1, keepdims=True)
    ctx_ref[...] = corr * ctx_ref[...] + jnp.dot(
        p.astype(v_ref.dtype), v_ref[...], preferred_element_type=jnp.float32)
    m_ref[...] = m_new
    # dropout(p=0.0) is identity.  TODO(synk): stochastic dropout not implemented.

    @pl.when(ki == nk - 1)
    def _():
        # Normalize this head's context and fold "concat heads + output WFLinear"
        # into a per-head accumulate.  Exact reciprocal keeps tight correctness;
        # pl.reciprocal(..., approx=True) is acceptable for inference.
        ctx = ctx_ref[...] * (1.0 / l_ref[...])
        acc_ref[...] += jnp.dot(ctx.astype(wo_ref.dtype), wo_ref[...],
                                preferred_element_type=jnp.float32)

    @pl.when(jnp.logical_and(ki == nk - 1, h == nh - 1))
    def _():                                  # last head & last kv tile: emit row tile
        o_ref[...] = (acc_ref[...] + bo_ref[...]).astype(o_ref.dtype)


# --------------------------------- wrapper ----------------------------------

def wf_mha_forward(params, q, k, v, language_id, mask=None, *,
                   compute_dtype=jnp.float32,
                   row_tile=256, q_tile=256, kv_tile=256):
    """WFMultiHeadAttention forward (inference, dropout=0).

    compute_dtype=jnp.bfloat16 gives bf16 MXU operands (f32 accumulation,
    softmax math in f32) — recommended on v5e/v6e/v7x.  Tiles are capped at
    256 (multiples of 128); on v5e prefer 128-sized tiles.
    """
    B, Sq, E = q.shape
    Bk, Sk, Ek = k.shape
    assert k.shape == v.shape and Bk == B and Ek == E
    H = int(params["num_heads"])
    D = E // H
    q_scale = 1.0 / D          # head_dim**-0.5 * (1/sqrt(d_k))

    cdt = compute_dtype
    out_dtype = q.dtype
    f32 = jnp.float32

    qx = q.reshape(B * Sq, E).astype(cdt)
    kx = k.reshape(B * Sk, E).astype(cdt)
    vx = v.reshape(B * Sk, E).astype(cdt)

    wq = params["wq"].astype(cdt)
    wk = params["wk"].astype(cdt)
    # WFLinear effective weights folded on host (one tiny elementwise op):
    # halves weight DMA traffic / VMEM vs shipping both factors into kernels.
    wv = (params["wv_share"] * params["wv_spec"][language_id]).astype(cdt)
    wo = (params["wo_share"] * params["wo_spec"][language_id]).astype(cdt)

    bq = params["bq"].reshape(1, E).astype(f32)
    bk = params["bk"].reshape(1, E).astype(f32)
    # TODO(synk): WFLinear bias rule assumed to be b_share + b_spec[lang].
    bv = (params["bv_share"] + params["bv_spec"][language_id]).reshape(1, E).astype(f32)
    bo = (params["bo_share"] + params["bo_spec"][language_id]).reshape(1, E).astype(f32)

    if mask is None:
        bias = jnp.zeros((B, 1, Sk), f32)
    else:   # additive pad-mask bias: 0 where kept, -1e9 where padded
        bias = ((mask.astype(f32) - 1.0) * 1e9).reshape(B, 1, Sk)

    row_cparams = pltpu.CompilerParams(dimension_semantics=("parallel",),
                                       vmem_limit_bytes=_VMEM_LIMIT)

    # ---- Q projection (row-tiled GEMM grid) --------------------------------
    tmq = _largest_tile(B * Sq, row_tile)
    Q = pl.pallas_call(
        partial(_q_proj_kernel, scale=q_scale),
        out_shape=jax.ShapeDtypeStruct((B * Sq, E), cdt),
        grid=(B * Sq // tmq,),
        in_specs=[pl.BlockSpec((tmq, E), lambda i: (i, 0)),
                  pl.BlockSpec((E, E), lambda i: (0, 0)),
                  pl.BlockSpec((1, E), lambda i: (0, 0))],
        out_specs=pl.BlockSpec((tmq, E), lambda i: (i, 0)),
        compiler_params=row_cparams,
    )(qx, wq, bq)

    # ---- K / V projections (share the row grid) ----------------------------
    tmk = _largest_tile(B * Sk, row_tile)
    K, V = pl.pallas_call(
        _kv_proj_kernel,
        out_shape=(jax.ShapeDtypeStruct((B * Sk, E), cdt),
                   jax.ShapeDtypeStruct((B * Sk, E), cdt)),
        grid=(B * Sk // tmk,),
        in_specs=[pl.BlockSpec((tmk, E), lambda i: (i, 0)),
                  pl.BlockSpec((tmk, E), lambda i: (i, 0)),
                  pl.BlockSpec((E, E), lambda i: (0, 0)),
                  pl.BlockSpec((E, E), lambda i: (0, 0)),
                  pl.BlockSpec((1, E), lambda i: (0, 0)),
                  pl.BlockSpec((1, E), lambda i: (0, 0))],
        out_specs=(pl.BlockSpec((tmk, E), lambda i: (i, 0)),
                   pl.BlockSpec((tmk, E), lambda i: (i, 0))),
        compiler_params=row_cparams,
    )(kx, vx, wk, wv, bk, bv)

    # ---- head split: (B, H, S, D) so each head's D is the full lane tile ---
    Qh = Q.reshape(B, Sq, H, D).transpose(0, 2, 1, 3)
    Kh = K.reshape(B, Sk, H, D).transpose(0, 2, 1, 3)
    Vh = V.reshape(B, Sk, H, D).transpose(0, 2, 1, 3)

    # ---- flash attention + fused output WF projection ----------------------
    tq = _largest_tile(Sq, q_tile)
    tk = _largest_tile(Sk, kv_tile)
    grid = (B, Sq // tq, H, Sk // tk)

    out = pl.pallas_call(
        _flash_wf_kernel,
        out_shape=jax.ShapeDtypeStruct((B, Sq, E), out_dtype),
        grid=grid,
        in_specs=[
            pl.BlockSpec((None, 1, Sk), lambda b, qi, h, ki: (b, 0, 0)),            # pad bias
            pl.BlockSpec((None, None, tq, D), lambda b, qi, h, ki: (b, h, qi, 0)),  # Q tile
            pl.BlockSpec((None, None, tk, D), lambda b, qi, h, ki: (b, h, ki, 0)),  # K tile
            pl.BlockSpec((None, None, tk, D), lambda b, qi, h, ki: (b, h, ki, 0)),  # V tile
            pl.BlockSpec((D, E), lambda b, qi, h, ki: (h, 0)),                      # Wo head rows
            pl.BlockSpec((1, E), lambda b, qi, h, ki: (0, 0)),                      # bo
        ],
        out_specs=pl.BlockSpec((None, tq, E), lambda b, qi, h, ki: (b, qi, 0)),
        scratch_shapes=[pltpu.VMEM((tq, 1), jnp.float32),   # m (running max)
                        pltpu.VMEM((tq, 1), jnp.float32),   # l (running denom)
                        pltpu.VMEM((tq, D), jnp.float32),   # per-head ctx accumulator
                        pltpu.VMEM((tq, E), jnp.float32)],  # output-row accumulator
        compiler_params=pltpu.CompilerParams(
            dimension_semantics=("parallel", "parallel", "arbitrary", "arbitrary"),
            vmem_limit_bytes=_VMEM_LIMIT),
    )(bias, Qh, Kh, Vh, wo, bo)

    return out


# -------------------------- reference (pure JAX) ----------------------------

def _ref_forward(params, q, k, v, language_id, mask):
    B, S, E = q.shape
    H = params["num_heads"]
    D = E // H
    scaling = D ** (-0.5)
    K = k @ params["wk"] + params["bk"]
    Q = (q @ params["wq"] + params["bq"]) * scaling
    Vw = params["wv_share"] * params["wv_spec"][language_id]
    V = v @ Vw + (params["bv_share"] + params["bv_spec"][language_id])
    Q = Q.reshape(B, S, H, D).transpose(0, 2, 1, 3)
    K = K.reshape(B, S, H, D).transpose(0, 2, 1, 3)
    V = V.reshape(B, S, H, D).transpose(0, 2, 1, 3)
    alpha = jnp.einsum("bhqd,bhkd->bhqk", Q, K) / math.sqrt(D)
    alpha = jnp.where(mask[:, None, None, :] == 0, -1e9, alpha)
    alpha = jax.nn.softmax(alpha, axis=-1)
    sc = jnp.einsum("bhqk,bhkd->bhqd", alpha, V)
    concat = sc.transpose(0, 2, 1, 3).reshape(B, S, E)
    Ow = params["wo_share"] * params["wo_spec"][language_id]
    return concat @ Ow + (params["bo_share"] + params["bo_spec"][language_id])


# --------------------------------- main --------------------------------------

if __name__ == "__main__":
    embed_dim, num_heads, language_num = 32, 4, 3
    B, S = 2, 8
    language_id = 1

    key = jax.random.PRNGKey(0)
    ks = jax.random.split(key, 16)

    params = {
        "num_heads": num_heads,
        # nn.Linear(E, E): weight stored here already transposed to (in, out)
        "wq": 0.1 * jax.random.normal(ks[0], (embed_dim, embed_dim), jnp.float32),
        "bq": 0.1 * jax.random.normal(ks[1], (embed_dim,), jnp.float32),
        "wk": 0.1 * jax.random.normal(ks[2], (embed_dim, embed_dim), jnp.float32),
        "bk": 0.1 * jax.random.normal(ks[3], (embed_dim,), jnp.float32),
        # WFLinear(E, E, language_num): shared + per-language factors
        "wv_share": 0.1 * jax.random.normal(ks[4], (embed_dim, embed_dim), jnp.float32),
        "wv_spec": 1.0 + 0.1 * jax.random.normal(ks[5], (language_num, embed_dim, embed_dim), jnp.float32),
        "bv_share": 0.1 * jax.random.normal(ks[6], (embed_dim,), jnp.float32),
        "bv_spec": 0.1 * jax.random.normal(ks[7], (language_num, embed_dim), jnp.float32),
        "wo_share": 0.1 * jax.random.normal(ks[8], (embed_dim, embed_dim), jnp.float32),
        "wo_spec": 1.0 + 0.1 * jax.random.normal(ks[9], (language_num, embed_dim, embed_dim), jnp.float32),
        "bo_share": 0.1 * jax.random.normal(ks[10], (embed_dim,), jnp.float32),
        "bo_spec": 0.1 * jax.random.normal(ks[11], (language_num, embed_dim), jnp.float32),
    }

    q = jax.random.normal(ks[12], (B, S, embed_dim), jnp.float32)
    k = jax.random.normal(ks[13], (B, S, embed_dim), jnp.float32)
    v = jax.random.normal(ks[14], (B, S, embed_dim), jnp.float32)
    # pad mask: last two positions of batch 1 are padding
    mask = jnp.ones((B, S), jnp.float32).at[1, -2:].set(0.0)

    ref = _ref_forward(params, q, k, v, language_id, mask)

    # f32 path: tight correctness check
    out = wf_mha_forward(params, q, k, v, language_id, mask,
                         compute_dtype=jnp.float32)
    out = jax.block_until_ready(out)
    assert out.shape == (B, S, embed_dim)
    assert jnp.allclose(out, ref, atol=5e-3, rtol=5e-3), "f32 mismatch vs reference"

    # bf16 MXU path (production setting): looser tolerance for bf16 rounding
    out_bf16 = wf_mha_forward(params, q, k, v, language_id, mask,
                              compute_dtype=jnp.bfloat16)
    out_bf16 = jax.block_until_ready(out_bf16)
    assert jnp.allclose(out_bf16, ref, atol=1e-1, rtol=1e-1), "bf16 mismatch vs reference"

    print("KERNEL_OK")
</pallas_src>

<mosaic_0001>
module attributes {stable_mosaic.version = 11 : i64} {
  func.func @_q_proj_kernel(%arg0: i32, %arg1: memref<16x32xf32, #tpu.memory_space<vmem>>, %arg2: memref<32x32xf32, #tpu.memory_space<vmem>>, %arg3: memref<1x32xf32, #tpu.memory_space<vmem>>, %arg4: memref<16x32xf32, #tpu.memory_space<vmem>>) attributes {dimension_semantics = [#tpu.dimension_semantics<parallel>], iteration_bounds = array<i64: 1>, scalar_prefetch = 0 : i64, scratch_operands = 0 : i64, tpu.core_type = #tpu.core_type<tc>, window_params = [{transform_indices = @transform_0, window_bounds = array<i64: 16, 32>}, {pipeline_mode = #tpu.pipeline_mode<synchronous>, transform_indices = @transform_1, window_bounds = array<i64: 32, 32>}, {pipeline_mode = #tpu.pipeline_mode<synchronous>, transform_indices = @transform_2, window_bounds = array<i64: 1, 32>}, {transform_indices = @transform_3, window_bounds = array<i64: 16, 32>}]} {
    %c0 = arith.constant 0 : index
    %c0_0 = arith.constant 0 : index
    %0 = vector.load %arg1[%c0, %c0_0] : memref<16x32xf32, #tpu.memory_space<vmem>>, vector<16x32xf32>
    %c0_1 = arith.constant 0 : index
    %c0_2 = arith.constant 0 : index
    %1 = vector.load %arg2[%c0_1, %c0_2] : memref<32x32xf32, #tpu.memory_space<vmem>>, vector<32x32xf32>
    %cst = arith.constant dense<0.000000e+00> : vector<16x32xf32>
    %2 = tpu.matmul %0, %1, %cst {dimension_numbers = #tpu.dot_dimension_numbers<[1], [0], [0], [1], [0, 0, 1, 1], [], []>} : vector<16x32xf32>, vector<32x32xf32>, vector<16x32xf32> -> vector<16x32xf32>
    %c0_3 = arith.constant 0 : index
    %c0_4 = arith.constant 0 : index
    %3 = vector.load %arg3[%c0_3, %c0_4] : memref<1x32xf32, #tpu.memory_space<vmem>>, vector<1x32xf32>
    %4 = vector.broadcast %3 : vector<1x32xf32> to vector<16x32xf32>
    %5 = arith.addf %2, %4 : vector<16x32xf32>
    %cst_5 = arith.constant 1.250000e-01 : f32
    %6 = vector.broadcast %cst_5 : f32 to vector<16x32xf32>
    %7 = arith.mulf %5, %6 : vector<16x32xf32>
    %c0_6 = arith.constant 0 : index
    %c0_7 = arith.constant 0 : index
    %8 = vector.load %arg4[%c0_6, %c0_7] : memref<16x32xf32, #tpu.memory_space<vmem>>, vector<16x32xf32>
    tpu.vector_store %arg4[%c0_6, %c0_7], %7 {strides = array<i32>} : memref<16x32xf32, #tpu.memory_space<vmem>>, vector<16x32xf32>,
    return
  }
  func.func @transform_0(%arg0: i32) -> (i32, i32) {
    %c0_i32 = arith.constant 0 : i32
    %c0_i32_0 = arith.constant 0 : i32
    return %arg0, %c0_i32 : i32, i32
  }
  func.func @transform_1(%arg0: i32) -> (i32, i32) {
    %c0_i32 = arith.constant 0 : i32
    %c0_i32_0 = arith.constant 0 : i32
    %c0_i32_1 = arith.constant 0 : i32
    return %c0_i32, %c0_i32_0 : i32, i32
  }
  func.func @transform_2(%arg0: i32) -> (i32, i32) {
    %c0_i32 = arith.constant 0 : i32
    %c0_i32_0 = arith.constant 0 : i32
    %c0_i32_1 = arith.constant 0 : i32
    return %c0_i32, %c0_i32_0 : i32, i32
  }
  func.func @transform_3(%arg0: i32) -> (i32, i32) {
    %c0_i32 = arith.constant 0 : i32
    %c0_i32_0 = arith.constant 0 : i32
    return %arg0, %c0_i32 : i32, i32
  }
}

</mosaic_0001>

<bundles_post_ra>
// kernel: tpu_custom_call.1
= control target key start
LH: loop header
LB: loop body
LE: loop exit
PB: predicated region body
PF: predicated region fallthrough
CT: control target
= control target key end

     0   :  { %8 = vsyncpa [#allocation3], 0  ;;  %s342_s0 = inlined_call_operand.hbm [shape: f32[16,32], index: 0, kind: input, shape index: {}]   ;;  %s343_s1 = inlined_call_operand.hbm [shape: f32[32,32], index: 1, kind: input, shape index: {}]   ;;  %s344_s2 = inlined_call_operand.vmem [shape: f32[1,32], index: 2, kind: input, shape index: {}]   ;;  %s345_s3 = inlined_call_operand.hbm [shape: f32[16,32], index: 3, kind: output, shape index: {}]  }
   0x1   :  { %9 = vsyncpa [#allocation6], 0 }
   0x2   :  { %10 = vsyncpa [#allocation4], 0  ;;  %s265_s12 = smov [#allocation2]   ;;  %s193_s16 = scalar_lea.hbm %s342_s0, 256 }
   0x3   :  { %s16_s13 = sshll.u32 %s265_s12, 4  ;;  %p194_p0 = scmp.ne.s32.totalorder %s342_s0, %s193_s16  ;;  %s17_s13 = int_to_ptr.vmem [resolvable:$true] %s16_s13 }
   0x4   :  { %p197_p1 = scmp.lt.u32.totalorder %s193_s16, %s342_s0 }
   0x6   :  { %p199_p2 = pnand %p197_p1, %p194_p0 }
   0x8   :  { %202 = shalt.err (!%p199_p2)
}
   0x9   :  { %s203_s21 = scalar_lea.vmem %s17_s13, 256  ;;  %p208_p4 = scmp.lt.s32.totalorder %s17_s13, %s17_s13 }
   0xa   :  { %p204_p3 = scmp.ne.s32.totalorder %s17_s13, %s203_s21  ;;  %p209_p5 = scmp.lt.s32.totalorder %s203_s21, %s203_s21 }
   0xc   :  { %p210_p6 = por %p209_p5, %p208_p4 }
   0xe   :  { %p211_p7 = pnand %p210_p6, %p204_p3 }
  0x10   :  { %214 = shalt.err (!%p211_p7)
}
  0x11   :  { %s266_s22 = smov 128   ;;  %s267_s23 = smov 8  }
  0x12   :  { %22 = dma.hbm_to_vmem [thread:$0]  %s342_s0, 256, %s17_s13, [#allocation3], %s266_s22, %s266_s22, %s267_s23  }
  0x13   :  { %s268_s26 = smov [#allocation5]   ;;  %s215_s30 = scalar_lea.hbm %s343_s1, 512 }
  0x14   :  { %s28_s27 = sshll.u32 %s268_s26, 4  ;;  %p216_p8 = scmp.ne.s32.totalorder %s343_s1, %s215_s30  ;;  %s29_s27 = int_to_ptr.vmem [resolvable:$true] %s28_s27 }
  0x15   :  { %p219_p9 = scmp.lt.u32.totalorder %s215_s30, %s343_s1 }
  0x17   :  { %p221_p10 = pnand %p219_p9, %p216_p8 }
  0x19   :  { %224 = shalt.err (!%p221_p10)
}
  0x1a   :  { %s225_s8 = scalar_lea.vmem %s29_s27, 512  ;;  %p230_p12 = scmp.lt.s32.totalorder %s29_s27, %s29_s27 }
  0x1b   :  { %p226_p11 = scmp.ne.s32.totalorder %s29_s27, %s225_s8  ;;  %p231_p13 = scmp.lt.s32.totalorder %s225_s8, %s225_s8 }
  0x1d   :  { %p232_p0 = por %p231_p13, %p230_p12 }
  0x1f   :  { %p233_p1 = pnand %p232_p0, %p226_p11 }
  0x21   :  { %236 = shalt.err (!%p233_p1)
}
  0x22   :  { %34 = dma.hbm_to_vmem [thread:$0]  %s343_s1, 512, %s29_s27, [#allocation6], %s266_s22, %s266_s22, %s267_s23  }
  0x23   :  { %259 = dma.done.wait [#allocation3], 256  }
  0x24   :  { %260 = vsyncadd [#allocation3], 4294967040 }
  0x25   :  { %261 = dma.done.wait [#allocation6], 512  }
  0x26   :  { %262 = vsyncadd [#allocation6], 4294966784  ;;  %vm56_vm0 = vcmask 261120   ;;  %v45_v0 = vld [vmem:[#allocation5] sm:$0xff]  ;;  %v46_v1 = vld [vmem:[#allocation5 + $0x8] sm:$0xff]  ;;  %s269_s11 = smov [#allocation7]  }
  0x27   :  { %v47_v2 = vld [vmem:[#allocation5 + $0x10] sm:$0xff]  ;;  %v180_v3 = vpack.c.bf16 %v46_v1, %v45_v0  ;;  %v48_v4 = vld [vmem:[#allocation5 + $0x18] sm:$0xff]  ;;  %s147_s12 = sshll.u32 %s269_s11, 4  ;;  %s148_s12 = int_to_ptr.vmem [resolvable:$true] %s147_s12 }
  0x28   :  { %v43_v5 = vld [vmem:[#allocation2] sm:$0xff]  ;;  %v184_v6 = vpack.c.bf16 %v48_v4, %v47_v2  ;;  %v44_v7 = vld [vmem:[#allocation2 + $0x8] sm:$0xff]  ;;  %s237_s13 = scalar_lea.vmem %s148_s12, 256  ;;  %p242_p3 = scmp.lt.s32.totalorder %s148_s12, %s148_s12 }
  0x29   :  { %177 = vmatprep.mubr.msk.f32.mxu0 %vm56_vm0, %v43_v5  ;;  %181 = vmatprep.subr.bf16.mxu0 %v180_v3  ;;  %v160_v8 = vld [vmem:[%s344_s2] ss:$0 sm:$0xff]  ;;  %p238_p2 = scmp.ne.s32.totalorder %s148_s12, %s237_s13  ;;  %p243_p4 = scmp.lt.s32.totalorder %s237_s13, %s237_s13 }
  0x2a   :  { %183 = vmatpush3.bf16.msra.mxu0 %v180_v3 }
  0x2b   :  { %185 = vmatprep.subr.bf16.mxu0 %v184_v6  ;;  %p244_p5 = por %p243_p4, %p242_p3 }
  0x2d   :  { %p245_p6 = pnand %p244_p5, %p238_p2 }
  0x2e   :  { %187 = vmatpush3.bf16.msra.mxu0 %v184_v6 }
  0x31   :  { %178 = vmatmul.mubr.msk.f32.vlgmr.msra.gmra.mrb[0].mxu0 %vm56_vm0, %v44_v7 }
 0x104   :  { %v179_v9 = vpop.f32.mrb[0].mxu0 }
 0x105   :  { %v135_v10 = vadd.f32 %v179_v9, %v160_v8  ;;  %v129_v11 = vpop.f32.mrb[1].mxu0 }
 0x106   :  { %v130_v12 = vadd.f32 %v160_v8, %v129_v11 }
 0x107   :  { %v139_v13 = vmul.f32 0.125, %v135_v10 }
 0x108   :  { %v138_v14 = vmul.f32 0.125, %v130_v12 }
 0x109   :  { %141 = vst.msk [vmem:[#allocation7 + $0x8] sm:$0xff] %vm56_vm0, %v139_v13 }
 0x10a   :  { %140 = vst.msk [vmem:[#allocation7] sm:$0xff] %vm56_vm0, %v138_v14 }
 0x10b   :  { %248 = shalt.err (!%p245_p6)
}
 0x10c   :  { %s249_s15 = scalar_lea.hbm %s345_s3, 256 }
 0x10d   :  { %p250_p7 = scmp.ne.s32.totalorder %s345_s3, %s249_s15  ;;  %p253_p8 = scmp.lt.u32.totalorder %s249_s15, %s345_s3 }
 0x10f   :  { %p255_p9 = pnand %p253_p8, %p250_p7 }
 0x111   :  { %258 = shalt.err (!%p255_p9)
}
 0x112   :  { %153 = dma.vmem_to_hbm [thread:$0]  %s148_s12, 256, %s345_s3, [#allocation4], %s266_s22, %s266_s22, %s267_s23  }
 0x113   :  { %263 = dma.done.wait [#allocation4], 256  }
 0x114   :  { %264 = vsyncadd [#allocation4], 4294967040 }
 0x115   :  { %157 = vsyncpa [#allocation3], 1 }
 0x116   :  { %158 = vsyncpa [#allocation6], 1 }
 0x117   :  { %159 = vsyncpa [#allocation4], 1 }

</bundles_post_ra>
